<compile_context>
chip_gen: v7x
topology: tpu7x:2x2x1
jax: 0.10.0
libtpu: 0.0.40
codegen_flags: <defaults>
</compile_context>

<pallas_src>
import jax
import jax.numpy as jnp
from jax import lax
from jax.experimental import pallas as pl
from jax.experimental.pallas import tpu as pltpu

EPS = 1e-5
LANE = 128


def _round_up(v, m):
    return -(-v // m) * m


def _pad_dim(a, axis, target):
    pad = target - a.shape[axis]
    if pad == 0:
        return a
    widths = [(0, 0)] * a.ndim
    widths[axis] = (0, pad)
    return jnp.pad(a, widths)


def residual_kernel(x_ref, w1_ref, g1_ref, be1_ref, w2_ref, g2_ref, be2_ref,
                    o_ref, acc_ref):
    k = pl.program_id(0)

    @pl.when(k == 0)
    def _init():
        acc_ref[...] = jnp.zeros_like(acc_ref)

    x = x_ref[...]
    inv_n = jnp.float32(1.0 / x.shape[0])   # true batch size (N is never padded)

    # ---- Linear(in -> mid), bias omitted: cancelled exactly by BN1 ----------
    # (bf16-casting x/W here is a further option on v6e/v7x; kept f32 to match
    #  the f32 PyTorch module bit-for-bit within tolerance.)
    h = jnp.dot(x, w1_ref[...], preferred_element_type=jnp.float32)

    # ---- BatchNorm1d(mid), training mode, biased var: single-pass stats, ----
    # ---- folded into one per-feature scale+shift, fused with ReLU        ----
    s1 = jnp.sum(h, axis=0, keepdims=True)
    q1 = jnp.sum(h * h, axis=0, keepdims=True)
    mean1 = s1 * inv_n
    var1 = jnp.maximum(q1 * inv_n - mean1 * mean1, 0.0)
    a1 = g1_ref[...] * lax.rsqrt(var1 + EPS)
    c1 = be1_ref[...] - mean1 * a1
    h = jnp.maximum(h * a1 + c1, 0.0)

    # ---- Linear(mid -> in), bias omitted (cancelled by BN2): accumulate -----
    # ---- partial sums over mid-channel tiles                            -----
    acc_ref[...] += jnp.dot(h, w2_ref[...], preferred_element_type=jnp.float32)

    # ---- finalize: BatchNorm1d(in) on the full accumulator, single store ----
    @pl.when(k == pl.num_programs(0) - 1)
    def _finalize():
        y = acc_ref[...]
        s2 = jnp.sum(y, axis=0, keepdims=True)
        q2 = jnp.sum(y * y, axis=0, keepdims=True)
        mean2 = s2 * inv_n
        var2 = jnp.maximum(q2 * inv_n - mean2 * mean2, 0.0)
        a2 = g2_ref[...] * lax.rsqrt(var2 + EPS)
        c2 = be2_ref[...] - mean2 * a2
        o_ref[...] = (y * a2 + c2).astype(o_ref.dtype)


def residual_forward(x, params):
    """x: (N, in_channels) float32. params: dict of kernel-ready arrays."""
    N, Cin = x.shape
    Cmid = params["w1_t"].shape[1]

    # Lane-dense padding of the feature (lane) dims only.
    cin_p = _round_up(Cin, LANE)
    cmid_p = _round_up(Cmid, LANE)

    x_p = _pad_dim(x, 1, cin_p)
    w1 = _pad_dim(_pad_dim(params["w1_t"], 0, cin_p), 1, cmid_p)
    g1 = _pad_dim(params["g1"], 1, cmid_p)
    be1 = _pad_dim(params["be1"], 1, cmid_p)
    w2 = _pad_dim(_pad_dim(params["w2_t"], 0, cmid_p), 1, cin_p)
    g2 = _pad_dim(params["g2"], 1, cin_p)
    be2 = _pad_dim(params["be2"], 1, cin_p)

    # Tile the mid-channel reduction axis (multiple of 128, bounded so
    # double-buffered weight tiles + x + accumulator fit v7x's smaller VMEM).
    t_mid = 512 if cmid_p % 512 == 0 else (256 if cmid_p % 256 == 0 else 128)
    t_mid = min(t_mid, cmid_p)
    grid = (cmid_p // t_mid,)

    out_p = pl.pallas_call(
        residual_kernel,
        out_shape=jax.ShapeDtypeStruct((N, cin_p), x.dtype),
        grid_spec=pltpu.PrefetchScalarGridSpec(
            num_scalar_prefetch=0,
            grid=grid,
            in_specs=[
                pl.BlockSpec((N, cin_p), lambda k: (0, 0)),      # x (resident)
                pl.BlockSpec((cin_p, t_mid), lambda k: (0, k)),  # W1^T tile
                pl.BlockSpec((1, t_mid), lambda k: (0, k)),      # gamma1 tile
                pl.BlockSpec((1, t_mid), lambda k: (0, k)),      # beta1 tile
                pl.BlockSpec((t_mid, cin_p), lambda k: (k, 0)),  # W2^T tile
                pl.BlockSpec((1, cin_p), lambda k: (0, 0)),      # gamma2
                pl.BlockSpec((1, cin_p), lambda k: (0, 0)),      # beta2
            ],
            out_specs=pl.BlockSpec((N, cin_p), lambda k: (0, 0)),
            scratch_shapes=[pltpu.VMEM((N, cin_p), jnp.float32)],
        ),
        compiler_params=pltpu.CompilerParams(
            dimension_semantics=("arbitrary",),   # reduction axis
        ),
    )(x_p, w1, g1, be1, w2, g2, be2)

    return out_p[:, :Cin]


def init_params(key, in_channels, mid_channels):
    """Deterministic synthetic parameters matching the PyTorch module shapes."""
    k1, k2, k3, k4 = jax.random.split(key, 4)
    # nn.Linear(in, mid): weight (mid, in), bias (mid,). Stored transposed.
    w1 = jax.random.normal(k1, (mid_channels, in_channels), jnp.float32) * 0.1
    b1 = jax.random.normal(k2, (mid_channels,), jnp.float32) * 0.1
    # nn.Linear(mid, in): weight (in, mid), bias (in,)
    w2 = jax.random.normal(k3, (in_channels, mid_channels), jnp.float32) * 0.1
    b2 = jax.random.normal(k4, (in_channels,), jnp.float32) * 0.1
    return {
        "w1_t": w1.T,                                   # (in, mid)
        "b1": b1.reshape(1, mid_channels),              # reference only
        "g1": jnp.ones((1, mid_channels), jnp.float32),
        "be1": jnp.zeros((1, mid_channels), jnp.float32),
        "w2_t": w2.T,                                   # (mid, in)
        "b2": b2.reshape(1, in_channels),               # reference only
        "g2": jnp.ones((1, in_channels), jnp.float32),
        "be2": jnp.zeros((1, in_channels), jnp.float32),
    }


def residual_reference(x, p):
    """Pure-JAX reference WITH the linear biases (proves the cancellation)."""
    h = x @ p["w1_t"] + p["b1"]
    m = h.mean(0, keepdims=True)
    v = ((h - m) ** 2).mean(0, keepdims=True)
    h = (h - m) / jnp.sqrt(v + EPS) * p["g1"] + p["be1"]
    h = jnp.maximum(h, 0.0)
    y = h @ p["w2_t"] + p["b2"]
    m2 = y.mean(0, keepdims=True)
    v2 = ((y - m2) ** 2).mean(0, keepdims=True)
    return (y - m2) / jnp.sqrt(v2 + EPS) * p["g2"] + p["be2"]


if __name__ == "__main__":
    in_channels, mid_channels, batch = 32, 64, 8
    key = jax.random.PRNGKey(0)
    kx, kp = jax.random.split(key)
    x = jax.random.normal(kx, (batch, in_channels), jnp.float32)
    params = init_params(kp, in_channels, mid_channels)

    out = jax.block_until_ready(residual_forward(x, params))

    ref = residual_reference(x, params)
    assert out.shape == (batch, in_channels)
    assert jnp.allclose(out, ref, atol=1e-4, rtol=1e-4), \
        float(jnp.max(jnp.abs(out - ref)))
    print("KERNEL_OK")
</pallas_src>

<mosaic_0001>
module attributes {stable_mosaic.version = 11 : i64} {
  func.func @residual_kernel(%arg0: i32, %arg1: memref<8x128xf32, #tpu.memory_space<vmem>>, %arg2: memref<128x128xf32, #tpu.memory_space<vmem>>, %arg3: memref<1x128xf32, #tpu.memory_space<vmem>>, %arg4: memref<1x128xf32, #tpu.memory_space<vmem>>, %arg5: memref<128x128xf32, #tpu.memory_space<vmem>>, %arg6: memref<1x128xf32, #tpu.memory_space<vmem>>, %arg7: memref<1x128xf32, #tpu.memory_space<vmem>>, %arg8: memref<8x128xf32, #tpu.memory_space<vmem>>, %arg9: memref<8x128xf32, #tpu.memory_space<vmem>>) attributes {dimension_semantics = [#tpu.dimension_semantics<arbitrary>], iteration_bounds = array<i64: 1>, scalar_prefetch = 0 : i64, scratch_operands = 1 : i64, tpu.core_type = #tpu.core_type<tc>, window_params = [{pipeline_mode = #tpu.pipeline_mode<synchronous>, transform_indices = @transform_0, window_bounds = array<i64: 8, 128>}, {transform_indices = @transform_1, window_bounds = array<i64: 128, 128>}, {transform_indices = @transform_2, window_bounds = array<i64: 1, 128>}, {transform_indices = @transform_3, window_bounds = array<i64: 1, 128>}, {transform_indices = @transform_4, window_bounds = array<i64: 128, 128>}, {pipeline_mode = #tpu.pipeline_mode<synchronous>, transform_indices = @transform_5, window_bounds = array<i64: 1, 128>}, {pipeline_mode = #tpu.pipeline_mode<synchronous>, transform_indices = @transform_6, window_bounds = array<i64: 1, 128>}, {pipeline_mode = #tpu.pipeline_mode<synchronous>, transform_indices = @transform_7, window_bounds = array<i64: 8, 128>}]} {
    %c0_i32 = arith.constant 0 : i32
    %0 = arith.cmpi eq, %arg0, %c0_i32 : i32
    %1 = arith.extui %0 : i1 to i32
    %c0_i32_0 = arith.constant 0 : i32
    %2 = arith.cmpi ne, %1, %c0_i32_0 : i32
    scf.if %2 {
      %cst_25 = arith.constant 0.000000e+00 : f32
      %41 = vector.broadcast %cst_25 : f32 to vector<8x128xf32>
      %c0_26 = arith.constant 0 : index
      %c0_27 = arith.constant 0 : index
      %42 = vector.load %arg9[%c0_26, %c0_27] : memref<8x128xf32, #tpu.memory_space<vmem>>, vector<8x128xf32>
      tpu.vector_store %arg9[%c0_26, %c0_27], %41 {strides = array<i32>} : memref<8x128xf32, #tpu.memory_space<vmem>>, vector<8x128xf32>,
    } else {
    }
    %c0 = arith.constant 0 : index
    %c0_1 = arith.constant 0 : index
    %3 = vector.load %arg1[%c0, %c0_1] : memref<8x128xf32, #tpu.memory_space<vmem>>, vector<8x128xf32>
    %c0_2 = arith.constant 0 : index
    %c0_3 = arith.constant 0 : index
    %4 = vector.load %arg2[%c0_2, %c0_3] : memref<128x128xf32, #tpu.memory_space<vmem>>, vector<128x128xf32>
    %cst = arith.constant dense<0.000000e+00> : vector<8x128xf32>
    %5 = tpu.matmul %3, %4, %cst {dimension_numbers = #tpu.dot_dimension_numbers<[1], [0], [0], [1], [0, 0, 1, 1], [], []>} : vector<8x128xf32>, vector<128x128xf32>, vector<8x128xf32> -> vector<8x128xf32>
    %cst_4 = arith.constant dense<0.000000e+00> : vector<128xf32>
    %6 = vector.multi_reduction <add>, %5, %cst_4 [0] : vector<8x128xf32> to vector<128xf32>
    %7 = vector.shape_cast %6 : vector<128xf32> to vector<1x128xf32>
    %8 = arith.mulf %5, %5 : vector<8x128xf32>
    %cst_5 = arith.constant dense<0.000000e+00> : vector<128xf32>
    %9 = vector.multi_reduction <add>, %8, %cst_5 [0] : vector<8x128xf32> to vector<128xf32>
    %10 = vector.shape_cast %9 : vector<128xf32> to vector<1x128xf32>
    %cst_6 = arith.constant 1.250000e-01 : f32
    %11 = vector.broadcast %cst_6 : f32 to vector<1x128xf32>
    %12 = arith.mulf %7, %11 : vector<1x128xf32>
    %cst_7 = arith.constant 1.250000e-01 : f32
    %13 = vector.broadcast %cst_7 : f32 to vector<1x128xf32>
    %14 = arith.mulf %10, %13 : vector<1x128xf32>
    %15 = arith.mulf %12, %12 : vector<1x128xf32>
    %16 = arith.subf %14, %15 : vector<1x128xf32>
    %cst_8 = arith.constant 0.000000e+00 : f32
    %17 = vector.broadcast %cst_8 : f32 to vector<1x128xf32>
    %18 = arith.maximumf %16, %17 : vector<1x128xf32>
    %c0_9 = arith.constant 0 : index
    %c0_10 = arith.constant 0 : index
    %19 = vector.load %arg3[%c0_9, %c0_10] : memref<1x128xf32, #tpu.memory_space<vmem>>, vector<1x128xf32>
    %cst_11 = arith.constant 9.99999974E-6 : f32
    %20 = vector.broadcast %cst_11 : f32 to vector<1x128xf32>
    %21 = arith.addf %18, %20 : vector<1x128xf32>
    %22 = math.rsqrt %21 : vector<1x128xf32>
    %23 = arith.mulf %19, %22 : vector<1x128xf32>
    %c0_12 = arith.constant 0 : index
    %c0_13 = arith.constant 0 : index
    %24 = vector.load %arg4[%c0_12, %c0_13] : memref<1x128xf32, #tpu.memory_space<vmem>>, vector<1x128xf32>
    %25 = arith.mulf %12, %23 : vector<1x128xf32>
    %26 = arith.subf %24, %25 : vector<1x128xf32>
    %27 = vector.broadcast %23 : vector<1x128xf32> to vector<8x128xf32>
    %28 = arith.mulf %5, %27 : vector<8x128xf32>
    %29 = vector.broadcast %26 : vector<1x128xf32> to vector<8x128xf32>
    %30 = arith.addf %28, %29 : vector<8x128xf32>
    %cst_14 = arith.constant 0.000000e+00 : f32
    %31 = vector.broadcast %cst_14 : f32 to vector<8x128xf32>
    %32 = arith.maximumf %30, %31 : vector<8x128xf32>
    %c0_15 = arith.constant 0 : index
    %c0_16 = arith.constant 0 : index
    %33 = vector.load %arg9[%c0_15, %c0_16] : memref<8x128xf32, #tpu.memory_space<vmem>>, vector<8x128xf32>
    %c0_17 = arith.constant 0 : index
    %c0_18 = arith.constant 0 : index
    %34 = vector.load %arg5[%c0_17, %c0_18] : memref<128x128xf32, #tpu.memory_space<vmem>>, vector<128x128xf32>
    %cst_19 = arith.constant dense<0.000000e+00> : vector<8x128xf32>
    %35 = tpu.matmul %32, %34, %cst_19 {dimension_numbers = #tpu.dot_dimension_numbers<[1], [0], [0], [1], [0, 0, 1, 1], [], []>} : vector<8x128xf32>, vector<128x128xf32>, vector<8x128xf32> -> vector<8x128xf32>
    %36 = arith.addf %33, %35 : vector<8x128xf32>
    %c0_20 = arith.constant 0 : index
    %c0_21 = arith.constant 0 : index
    %37 = vector.load %arg9[%c0_20, %c0_21] : memref<8x128xf32, #tpu.memory_space<vmem>>, vector<8x128xf32>
    tpu.vector_store %arg9[%c0_20, %c0_21], %36 {strides = array<i32>} : memref<8x128xf32, #tpu.memory_space<vmem>>, vector<8x128xf32>,
    %c0_i32_22 = arith.constant 0 : i32
    %38 = arith.cmpi eq, %arg0, %c0_i32_22 : i32
    %39 = arith.extui %38 : i1 to i32
    %cst_23 = arith.constant 1.250000e-01 : f32
    %c0_i32_24 = arith.constant 0 : i32
    %40 = arith.cmpi ne, %39, %c0_i32_24 : i32
    scf.if %40 {
      %c0_25 = arith.constant 0 : index
      %c0_26 = arith.constant 0 : index
      %41 = vector.load %arg9[%c0_25, %c0_26] : memref<8x128xf32, #tpu.memory_space<vmem>>, vector<8x128xf32>
      %cst_27 = arith.constant dense<0.000000e+00> : vector<128xf32>
      %42 = vector.multi_reduction <add>, %41, %cst_27 [0] : vector<8x128xf32> to vector<128xf32>
      %43 = vector.shape_cast %42 : vector<128xf32> to vector<1x128xf32>
      %44 = arith.mulf %41, %41 : vector<8x128xf32>
      %cst_28 = arith.constant dense<0.000000e+00> : vector<128xf32>
      %45 = vector.multi_reduction <add>, %44, %cst_28 [0] : vector<8x128xf32> to vector<128xf32>
      %46 = vector.shape_cast %45 : vector<128xf32> to vector<1x128xf32>
      %47 = vector.broadcast %cst_23 : f32 to vector<1x128xf32>
      %48 = arith.mulf %43, %47 : vector<1x128xf32>
      %49 = vector.broadcast %cst_23 : f32 to vector<1x128xf32>
      %50 = arith.mulf %46, %49 : vector<1x128xf32>
      %51 = arith.mulf %48, %48 : vector<1x128xf32>
      %52 = arith.subf %50, %51 : vector<1x128xf32>
      %cst_29 = arith.constant 0.000000e+00 : f32
      %53 = vector.broadcast %cst_29 : f32 to vector<1x128xf32>
      %54 = arith.maximumf %52, %53 : vector<1x128xf32>
      %c0_30 = arith.constant 0 : index
      %c0_31 = arith.constant 0 : index
      %55 = vector.load %arg6[%c0_30, %c0_31] : memref<1x128xf32, #tpu.memory_space<vmem>>, vector<1x128xf32>
      %cst_32 = arith.constant 9.99999974E-6 : f32
      %56 = vector.broadcast %cst_32 : f32 to vector<1x128xf32>
      %57 = arith.addf %54, %56 : vector<1x128xf32>
      %58 = math.rsqrt %57 : vector<1x128xf32>
      %59 = arith.mulf %55, %58 : vector<1x128xf32>
      %c0_33 = arith.constant 0 : index
      %c0_34 = arith.constant 0 : index
      %60 = vector.load %arg7[%c0_33, %c0_34] : memref<1x128xf32, #tpu.memory_space<vmem>>, vector<1x128xf32>
      %61 = arith.mulf %48, %59 : vector<1x128xf32>
      %62 = arith.subf %60, %61 : vector<1x128xf32>
      %63 = vector.broadcast %59 : vector<1x128xf32> to vector<8x128xf32>
      %64 = arith.mulf %41, %63 : vector<8x128xf32>
      %65 = vector.broadcast %62 : vector<1x128xf32> to vector<8x128xf32>
      %66 = arith.addf %64, %65 : vector<8x128xf32>
      %c0_35 = arith.constant 0 : index
      %c0_36 = arith.constant 0 : index
      %67 = vector.load %arg8[%c0_35, %c0_36] : memref<8x128xf32, #tpu.memory_space<vmem>>, vector<8x128xf32>
      tpu.vector_store %arg8[%c0_35, %c0_36], %66 {strides = array<i32>} : memref<8x128xf32, #tpu.memory_space<vmem>>, vector<8x128xf32>,
    } else {
    }
    return
  }
  func.func @transform_0(%arg0: i32) -> (i32, i32) {
    %c0_i32 = arith.constant 0 : i32
    %c0_i32_0 = arith.constant 0 : i32
    %c0_i32_1 = arith.constant 0 : i32
    return %c0_i32, %c0_i32_0 : i32, i32
  }
  func.func @transform_1(%arg0: i32) -> (i32, i32) {
    %c0_i32 = arith.constant 0 : i32
    %c0_i32_0 = arith.constant 0 : i32
    return %c0_i32, %arg0 : i32, i32
  }
  func.func @transform_2(%arg0: i32) -> (i32, i32) {
    %c0_i32 = arith.constant 0 : i32
    %c0_i32_0 = arith.constant 0 : i32
    return %c0_i32, %arg0 : i32, i32
  }
  func.func @transform_3(%arg0: i32) -> (i32, i32) {
    %c0_i32 = arith.constant 0 : i32
    %c0_i32_0 = arith.constant 0 : i32
    return %c0_i32, %arg0 : i32, i32
  }
  func.func @transform_4(%arg0: i32) -> (i32, i32) {
    %c0_i32 = arith.constant 0 : i32
    %c0_i32_0 = arith.constant 0 : i32
    return %arg0, %c0_i32 : i32, i32
  }
  func.func @transform_5(%arg0: i32) -> (i32, i32) {
    %c0_i32 = arith.constant 0 : i32
    %c0_i32_0 = arith.constant 0 : i32
    %c0_i32_1 = arith.constant 0 : i32
    return %c0_i32, %c0_i32_0 : i32, i32
  }
  func.func @transform_6(%arg0: i32) -> (i32, i32) {
    %c0_i32 = arith.constant 0 : i32
    %c0_i32_0 = arith.constant 0 : i32
    %c0_i32_1 = arith.constant 0 : i32
    return %c0_i32, %c0_i32_0 : i32, i32
  }
  func.func @transform_7(%arg0: i32) -> (i32, i32) {
    %c0_i32 = arith.constant 0 : i32
    %c0_i32_0 = arith.constant 0 : i32
    %c0_i32_1 = arith.constant 0 : i32
    return %c0_i32, %c0_i32_0 : i32, i32
  }
}

</mosaic_0001>

<bundles_post_ra>
// kernel: tpu_custom_call.1
= control target key start
LH: loop header
LB: loop body
LE: loop exit
PB: predicated region body
PF: predicated region fallthrough
CT: control target
= control target key end

     0   :  { %12 = vsyncpa [#allocation4], 0  ;;  %s737_s0 = inlined_call_operand.hbm [shape: f32[8,128], index: 0, kind: input, shape index: {}]   ;;  %s738_s1 = inlined_call_operand.hbm [shape: f32[128,128], index: 1, kind: input, shape index: {}]   ;;  %s739_s2 = inlined_call_operand.vmem [shape: f32[1,128], index: 2, kind: input, shape index: {}]   ;;  %s740_s3 = inlined_call_operand.vmem [shape: f32[1,128], index: 3, kind: input, shape index: {}]   ;;  %s741_s4 = inlined_call_operand.hbm [shape: f32[128,128], index: 4, kind: input, shape index: {}]   ;;  %s742_s5 = inlined_call_operand.vmem [shape: f32[1,128], index: 5, kind: input, shape index: {}]   ;;  %s743_s6 = inlined_call_operand.vmem [shape: f32[1,128], index: 6, kind: input, shape index: {}]   ;;  %s744_s7 = inlined_call_operand.hbm [shape: f32[8,128], index: 7, kind: output, shape index: {}]  }
   0x1   :  { %13 = vsyncpa [#allocation7], 0 }
   0x2   :  { %14 = vsyncpa [#allocation5], 0  ;;  %s606_s24 = smov [#allocation6]   ;;  %s512_s28 = scalar_lea.hbm %s738_s1, 2048 }
   0x3   :  { %s30_s25 = sshll.u32 %s606_s24, 4  ;;  %p513_p0 = scmp.ne.s32.totalorder %s738_s1, %s512_s28  ;;  %s31_s25 = int_to_ptr.vmem [resolvable:$true] %s30_s25 }
   0x4   :  { %p516_p1 = scmp.lt.u32.totalorder %s512_s28, %s738_s1 }
   0x6   :  { %p518_p2 = pnand %p516_p1, %p513_p0 }
   0x8   :  { %521 = shalt.err (!%p518_p2)
}
   0x9   :  { %s522_s10 = scalar_lea.vmem %s31_s25, 2048  ;;  %p527_p4 = scmp.lt.s32.totalorder %s31_s25, %s31_s25 }
   0xa   :  { %p523_p3 = scmp.ne.s32.totalorder %s31_s25, %s522_s10  ;;  %p528_p5 = scmp.lt.s32.totalorder %s522_s10, %s522_s10 }
   0xc   :  { %p529_p6 = por %p528_p5, %p527_p4 }
   0xe   :  { %p530_p7 = pnand %p529_p6, %p523_p3 }
  0x10   :  { %533 = shalt.err (!%p530_p7)
}
  0x11   :  { %s607_s11 = smov 128   ;;  %s608_s12 = smov 8  }
  0x12   :  { %36 = dma.hbm_to_vmem [thread:$0]  %s738_s1, 2048, %s31_s25, [#allocation7], %s607_s11, %s607_s11, %s608_s12  }
  0x13   :  { %s609_s15 = smov [#allocation3]   ;;  %s610_s17 = smov [#allocation8]  }
  0x14   :  { %s21_s16 = sshll.u32 %s609_s15, 4  ;;  %s46_s18 = sshll.u32 %s610_s17, 4  ;;  %s22_s16 = int_to_ptr.vmem [resolvable:$true] %s21_s16  ;;  %s47_s18 = int_to_ptr.vmem [resolvable:$true] %s46_s18 }
  0x15   :  { %s534_s21 = scalar_lea.hbm %s737_s0, 128 }
  0x16   :  { %p535_p8 = scmp.ne.s32.totalorder %s737_s0, %s534_s21  ;;  %p538_p9 = scmp.lt.u32.totalorder %s534_s21, %s737_s0 }
  0x18   :  { %p540_p10 = pnand %p538_p9, %p535_p8 }
  0x1a   :  { %543 = shalt.err (!%p540_p10)
}
  0x1b   :  { %s544_s1 = scalar_lea.vmem %s22_s16, 128  ;;  %p549_p12 = scmp.lt.s32.totalorder %s22_s16, %s22_s16 }
  0x1c   :  { %p545_p11 = scmp.ne.s32.totalorder %s22_s16, %s544_s1  ;;  %p550_p13 = scmp.lt.s32.totalorder %s544_s1, %s544_s1 }
  0x1e   :  { %p551_p0 = por %p550_p13, %p549_p12 }
  0x20   :  { %p552_p1 = pnand %p551_p0, %p545_p11 }
  0x22   :  { %555 = shalt.err (!%p552_p1)
}
  0x23   :  { %24 = dma.hbm_to_vmem [thread:$0]  %s737_s0, 128, %s22_s16, [#allocation4]  }
  0x24   :  { %s556_s30 = scalar_lea.hbm %s741_s4, 2048 }
  0x25   :  { %p557_p2 = scmp.ne.s32.totalorder %s741_s4, %s556_s30  ;;  %p560_p3 = scmp.lt.u32.totalorder %s556_s30, %s741_s4 }
  0x27   :  { %p562_p4 = pnand %p560_p3, %p557_p2 }
  0x29   :  { %565 = shalt.err (!%p562_p4)
}
  0x2a   :  { %s566_s14 = scalar_lea.vmem %s47_s18, 2048  ;;  %p571_p6 = scmp.lt.s32.totalorder %s47_s18, %s47_s18 }
  0x2b   :  { %p567_p5 = scmp.ne.s32.totalorder %s47_s18, %s566_s14  ;;  %p572_p7 = scmp.lt.s32.totalorder %s566_s14, %s566_s14 }
  0x2d   :  { %p573_p8 = por %p572_p7, %p571_p6 }
  0x2f   :  { %p574_p9 = pnand %p573_p8, %p567_p5 }
  0x31   :  { %577 = shalt.err (!%p574_p9)
}
  0x32   :  { %52 = dma.hbm_to_vmem [thread:$0]  %s741_s4, 2048, %s47_s18, [#allocation7], %s607_s11, %s607_s11, %s608_s12  }
  0x33   :  { %600 = dma.done.wait [#allocation4], 128  }
  0x34   :  { %601 = vsyncadd [#allocation4], 4294967168 }
  0x35   :  { %602 = dma.done.wait [#allocation7], 4096  }
  0x36   :  { %603 = vsyncadd [#allocation7], 4294963200  ;;  %v611_v0 = vmov 0.0|0.0   ;;  %vm612_vm0 = vmmov 0   ;;  %v613_v1 = vmov 0.0   ;;  %v72_v2 = vld [vmem:[#allocation6] sm:$0xff] }
  0x37   :  { %451 = vmatprep.subr.bf16.mxu0 %v611_v0  ;;  %413 = vmatprep.mubr.msk.f32.mxu0 %vm612_vm0, %v613_v1  ;;  %v73_v3 = vld [vmem:[#allocation6 + $0x8] sm:$0xff]  ;;  %v74_v4 = vld [vmem:[#allocation6 + $0x10] sm:$0xff]  ;;  %v75_v6 = vld [vmem:[#allocation6 + $0x18] sm:$0xff]  ;;  %s614_s19 = smov [#allocation9]  }
  0x38   :  { %475 = vmatprep.subr.bf16.mxu1 %v611_v0  ;;  %448 = vmatprep.mubr.msk.f32.mxu1 %vm612_vm0, %v613_v1  ;;  %v452_v5 = vpack.c.bf16 %v73_v3, %v72_v2  ;;  %v455_v7 = vpack.c.bf16 %v75_v6, %v74_v4  ;;  %v76_v8 = vld [vmem:[#allocation6 + $0x20] sm:$0xff]  ;;  %v77_v9 = vld [vmem:[#allocation6 + $0x28] sm:$0xff]  ;;  %v78_v11 = vld [vmem:[#allocation6 + $0x30] sm:$0xff]  ;;  %s337_s20 = sshll.u32 %s614_s19, 4  ;;  %s338_s20 = int_to_ptr.vmem [resolvable:$true] %s337_s20 }
  0x39   :  { %v458_v10 = vpack.c.bf16 %v77_v9, %v76_v8  ;;  %v79_v12 = vld [vmem:[#allocation6 + $0x38] sm:$0xff]  ;;  %v80_v14 = vld [vmem:[#allocation6 + $0x40] sm:$0xff]  ;;  %v81_v15 = vld [vmem:[#allocation6 + $0x48] sm:$0xff]  ;;  %v184_v8 = vlaneseq  ;;  %s578_s21 = scalar_lea.vmem %s338_s20, 128  ;;  %p583_p11 = scmp.lt.s32.totalorder %s338_s20, %s338_s20 }
  0x3a   :  { %453 = vmatpush3.bf16.msra.mxu0 %v452_v5  ;;  %v461_v13 = vpack.c.bf16 %v79_v12, %v78_v11  ;;  %v464_v16 = vpack.c.bf16 %v81_v15, %v80_v14  ;;  %v82_v17 = vld [vmem:[#allocation6 + $0x50] sm:$0xff]  ;;  %v83_v18 = vld [vmem:[#allocation6 + $0x58] sm:$0xff]  ;;  %v84_v20 = vld [vmem:[#allocation6 + $0x60] sm:$0xff]  ;;  %p579_p10 = scmp.ne.s32.totalorder %s338_s20, %s578_s21  ;;  %p584_p12 = scmp.lt.s32.totalorder %s578_s21, %s578_s21 }
  0x3b   :  { %454 = vmatprep.subr.bf16.mxu0 %v611_v0  ;;  %v467_v19 = vpack.c.bf16 %v83_v18, %v82_v17  ;;  %v85_v21 = vld [vmem:[#allocation6 + $0x68] sm:$0xff]  ;;  %v86_v23 = vld [vmem:[#allocation6 + $0x70] sm:$0xff]  ;;  %v87_v24 = vld [vmem:[#allocation6 + $0x78] sm:$0xff]  ;;  %v185_v9 = vshrl.u32 %v184_v8, 7 }
  0x3c   :  { %v470_v22 = vpack.c.bf16 %v85_v21, %v84_v20  ;;  %v473_v25 = vpack.c.bf16 %v87_v24, %v86_v23  ;;  %v71_v26 = vld [vmem:[#allocation3] sm:$0xff]  ;;  %v199_v27 = vld [vmem:[#allocation8] sm:$0xff]  ;;  %v200_v28 = vld [vmem:[#allocation8 + $0x8] sm:$0xff]  ;;  %p585_p13 = por %p584_p12, %p583_p11 }
  0x3d   :  { %v476_v29 = vpack.c.bf16 %v200_v28, %v199_v27  ;;  %v201_v30 = vld [vmem:[#allocation8 + $0x10] sm:$0xff]  ;;  %v202_v31 = vld [vmem:[#allocation8 + $0x18] sm:$0xff]  ;;  %v203_v33 = vld [vmem:[#allocation8 + $0x20] sm:$0xff]  ;;  %v186_v11 = vsub.s32 0, %v185_v9 }
  0x3e   :  { %456 = vmatpush3.bf16.msra.mxu0 %v455_v7  ;;  %v479_v32 = vpack.c.bf16 %v202_v31, %v201_v30  ;;  %v204_v34 = vld [vmem:[#allocation8 + $0x28] sm:$0xff]  ;;  %v205_v36 = vld [vmem:[#allocation8 + $0x30] sm:$0xff]  ;;  %v206_v37 = vld [vmem:[#allocation8 + $0x38] sm:$0xff]  ;;  %p586_p0 = pnand %p585_p13, %p579_p10 }
  0x3f   :  { %457 = vmatprep.subr.bf16.mxu0 %v611_v0  ;;  %477 = vmatpush3.bf16.msra.mxu1 %v476_v29  ;;  %v482_v35 = vpack.c.bf16 %v204_v34, %v203_v33  ;;  %v485_v38 = vpack.c.bf16 %v206_v37, %v205_v36  ;;  %v207_v39 = vld [vmem:[#allocation8 + $0x40] sm:$0xff]  ;;  %v208_v40 = vld [vmem:[#allocation8 + $0x48] sm:$0xff]  ;;  %v209_v42 = vld [vmem:[#allocation8 + $0x50] sm:$0xff] }
  0x40   :  { %478 = vmatprep.subr.bf16.mxu1 %v611_v0  ;;  %v488_v41 = vpack.c.bf16 %v208_v40, %v207_v39  ;;  %v210_v43 = vld [vmem:[#allocation8 + $0x58] sm:$0xff]  ;;  %v211_v45 = vld [vmem:[#allocation8 + $0x60] sm:$0xff]  ;;  %v212_v46 = vld [vmem:[#allocation8 + $0x68] sm:$0xff] }
  0x41   :  { %v491_v44 = vpack.c.bf16 %v210_v43, %v209_v42  ;;  %v494_v47 = vpack.c.bf16 %v212_v46, %v211_v45  ;;  %v213_v48 = vld [vmem:[#allocation8 + $0x70] sm:$0xff]  ;;  %v214_v49 = vld [vmem:[#allocation8 + $0x78] sm:$0xff] }
  0x42   :  { %459 = vmatpush3.bf16.msra.mxu0 %v458_v10  ;;  %v497_v50 = vpack.c.bf16 %v214_v49, %v213_v48  ;;  %v176_v10 = vld [vmem:[%s739_s2] sm:$0x1] }
  0x43   :  { %460 = vmatprep.subr.bf16.mxu0 %v611_v0  ;;  %480 = vmatpush3.bf16.msra.mxu1 %v479_v32  ;;  %v180_v14 = vld [vmem:[%s740_s3] sm:$0x1] }
  0x44   :  { %481 = vmatprep.subr.bf16.mxu1 %v611_v0  ;;  %v309_v43 = vld [vmem:[%s742_s5] sm:$0x1] }
  0x45   :  { %v313_v46 = vld [vmem:[%s743_s6] sm:$0x1] }
  0x46   :  { %462 = vmatpush3.bf16.msra.mxu0 %v461_v13 }
  0x47   :  { %463 = vmatprep.subr.bf16.mxu0 %v611_v0  ;;  %483 = vmatpush3.bf16.msra.mxu1 %v482_v35 }
  0x48   :  { %484 = vmatprep.subr.bf16.mxu1 %v611_v0 }
  0x4a   :  { %465 = vmatpush3.bf16.msra.mxu0 %v464_v16 }
  0x4b   :  { %466 = vmatprep.subr.bf16.mxu0 %v611_v0  ;;  %486 = vmatpush3.bf16.msra.mxu1 %v485_v38 }
  0x4c   :  { %487 = vmatprep.subr.bf16.mxu1 %v611_v0 }
  0x4e   :  { %468 = vmatpush3.bf16.msra.mxu0 %v467_v19 }
  0x4f   :  { %469 = vmatprep.subr.bf16.mxu0 %v611_v0  ;;  %489 = vmatpush3.bf16.msra.mxu1 %v488_v41 }
  0x50   :  { %490 = vmatprep.subr.bf16.mxu1 %v611_v0 }
  0x52   :  { %471 = vmatpush3.bf16.msra.mxu0 %v470_v22 }
  0x53   :  { %472 = vmatprep.subr.bf16.mxu0 %v611_v0  ;;  %492 = vmatpush3.bf16.msra.mxu1 %v491_v44 }
  0x54   :  { %493 = vmatprep.subr.bf16.mxu1 %v611_v0 }
  0x56   :  { %474 = vmatpush3.bf16.msra.mxu0 %v473_v25 }
  0x57   :  { %495 = vmatpush3.bf16.msra.mxu1 %v494_v47 }
  0x58   :  { %496 = vmatprep.subr.bf16.mxu1 %v611_v0 }
  0x59   :  { %414 = vmatmul.mubr.f32.vlgmr.msra.gmra.mrb[0].mxu0 %v71_v26 }
  0x5b   :  { %498 = vmatpush3.bf16.msra.mxu1 %v497_v50 }
 0x12c   :  { %v154_v51 = vpop.f32.mrb[0].mxu0 }
 0x12d   :  { %v158_v52 = vrot.slane %v154_v51, 4  ;;  %v164_v53 = vmul.f32 %v154_v51, %v154_v51  ;;  %v415_v54 = vpop.f32.mrb[1].mxu0 }
 0x12f   :  { %v159_v55 = vadd.f32 %v158_v52, %v154_v51  ;;  %v165_v56 = vrot.slane %v164_v53, 4 }
 0x131   :  { %v160_v57 = vrot.slane %v159_v55, 2  ;;  %v166_v58 = vadd.f32 %v165_v56, %v164_v53 }
 0x133   :  { %v161_v59 = vadd.f32 %v160_v57, %v159_v55  ;;  %v167_v60 = vrot.slane %v166_v58, 2 }
 0x135   :  { %v162_v61 = vrot.slane %v161_v59, 1  ;;  %v168_v62 = vadd.f32 %v167_v60, %v166_v58 }
 0x137   :  { %v163_v63 = vadd.f32 %v162_v61, %v161_v59  ;;  %v169_v1 = vrot.slane %v168_v62, 1 }
 0x139   :  { %v170_v2 = vadd.f32 %v169_v1, %v168_v62  ;;  %v171_v3 = vmul.f32 0.125, %v163_v63 }
 0x13b   :  { %v172_v4 = vmul.f32 0.125, %v170_v2  ;;  %v173_v5 = vmul.f32 %v171_v3, %v171_v3 }
 0x13d   :  { %v174_v0 = vsub.f32 %v172_v4, %v173_v5 }
 0x13f   :  { %v175_v6 = vmax.f32 %v174_v0, 0.0 }
 0x141   :  { %v177_v7 = vadd.f32 1e-05, %v175_v6 }
 0x143   :  { %508 = vrsqrt.f32 %v177_v7 }
 0x14d   :  { %v509_v12 = vpop.eup %508 }
 0x14e   :  { %v179_v13 = vmul.f32 %v509_v12, %v176_v10 }
 0x150   :  { %v187_v15 = vrot.slane %v179_v13, %v186_v11  ;;  %v181_v16 = vmul.f32 %v179_v13, %v171_v3 }
 0x152   :  { %v182_v17 = vsub.f32 %v180_v14, %v181_v16  ;;  %v189_v18 = vmul.f32 %v187_v15, %v154_v51 }
 0x154   :  { %v194_v19 = vrot.slane %v182_v17, %v186_v11 }
 0x156   :  { %v196_v20 = vadd.f32 %v194_v19, %v189_v18 }
 0x158   :  { %v197_v21 = vmax.f32 %v196_v20, 0.0 }
 0x15a   :  { %449 = vmatmul.mubr.f32.vlgmr.msra.gmra.mrb[0].mxu1 %v197_v21 }
 0x22d   :  { %v281_v22 = vpop.f32.mrb[0].mxu1 }
 0x22e   :  { %v291_v23 = vrot.slane %v281_v22, 4  ;;  %v297_v24 = vmul.f32 %v281_v22, %v281_v22  ;;  %v450_v25 = vpop.f32.mrb[1].mxu1 }
 0x230   :  { %v292_v26 = vadd.f32 %v291_v23, %v281_v22  ;;  %v298_v27 = vrot.slane %v297_v24, 4 }
 0x232   :  { %v293_v28 = vrot.slane %v292_v26, 2  ;;  %v299_v29 = vadd.f32 %v298_v27, %v297_v24 }
 0x234   :  { %v294_v30 = vadd.f32 %v293_v28, %v292_v26  ;;  %v300_v31 = vrot.slane %v299_v29, 2 }
 0x236   :  { %v295_v32 = vrot.slane %v294_v30, 1  ;;  %v301_v33 = vadd.f32 %v300_v31, %v299_v29 }
 0x238   :  { %v296_v34 = vadd.f32 %v295_v32, %v294_v30  ;;  %v302_v35 = vrot.slane %v301_v33, 1 }
 0x23a   :  { %v303_v36 = vadd.f32 %v302_v35, %v301_v33  ;;  %v304_v37 = vmul.f32 0.125, %v296_v34 }
 0x23c   :  { %v305_v38 = vmul.f32 0.125, %v303_v36  ;;  %v306_v39 = vmul.f32 %v304_v37, %v304_v37 }
 0x23e   :  { %v307_v40 = vsub.f32 %v305_v38, %v306_v39 }
 0x240   :  { %v308_v41 = vmax.f32 %v307_v40, 0.0 }
 0x242   :  { %v310_v42 = vadd.f32 1e-05, %v308_v41 }
 0x244   :  { %510 = vrsqrt.f32 %v310_v42 }
 0x24e   :  { %v511_v44 = vpop.eup %510 }
 0x24f   :  { %v312_v45 = vmul.f32 %v511_v44, %v309_v43 }
 0x251   :  { %v314_v47 = vmul.f32 %v312_v45, %v304_v37  ;;  %v320_v48 = vrot.slane %v312_v45, %v186_v11 }
 0x253   :  { %v315_v49 = vsub.f32 %v313_v46, %v314_v47  ;;  %v322_v50 = vmul.f32 %v320_v48, %v281_v22 }
 0x255   :  { %v327_v51 = vrot.slane %v315_v49, %v186_v11 }
 0x257   :  { %v329_v52 = vadd.f32 %v327_v51, %v322_v50 }
 0x259   :  { %330 = vst [vmem:[#allocation9] sm:$0xff] %v329_v52 }
 0x25a   :  { %589 = shalt.err (!%p586_p0)
}
 0x25b   :  { %s590_s6 = scalar_lea.hbm %s744_s7, 128 }
 0x25c   :  { %p591_p1 = scmp.ne.s32.totalorder %s744_s7, %s590_s6  ;;  %p594_p2 = scmp.lt.u32.totalorder %s590_s6, %s744_s7 }
 0x25e   :  { %p596_p3 = pnand %p594_p2, %p591_p1 }
 0x260   :  { %599 = shalt.err (!%p596_p3)
}
 0x261   :  { %340 = dma.vmem_to_hbm [thread:$0]  %s338_s20, 128, %s744_s7, [#allocation5]  }
 0x262   :  { %604 = dma.done.wait [#allocation5], 128  }
 0x263   :  { %605 = vsyncadd [#allocation5], 4294967168 }
 0x264   :  { %344 = vsyncpa [#allocation4], 1 }
 0x265   :  { %345 = vsyncpa [#allocation7], 1 }
 0x266   :  { %346 = vsyncpa [#allocation5], 1 }

</bundles_post_ra>
